<compile_context>
chip_gen: v7x
topology: tpu7x:2x2x1
jax: 0.10.0
libtpu: 0.0.40
codegen_flags: <defaults>
</compile_context>

<pallas_src>
import jax
import jax.numpy as jnp
from jax.experimental import pallas as pl
from jax.experimental.pallas import tpu as pltpu

_LANES = 512            # lane-dense last dim: 4 x 128 lanes
_MAX_BLOCK_ROWS = 2048  # 2048 x 512 f32 = 4 MiB per block per array
_MIN_GRID_STEPS = 4     # keep >= 4 grid steps so v7x's 2 TensorCores share work


def _torch_nn_kernel(params_ref, x_ref, o_ref):
    # params layout in SMEM: [w00, b00, w01, w10, b10, w11, final_bias]
    w00 = params_ref[0]
    b00 = params_ref[1]
    w01 = params_ref[2]
    w10 = params_ref[3]
    b10 = params_ref[4]
    w11 = params_ref[5]
    final_bias = params_ref[6]

    x = x_ref[...]
    top = jnp.maximum(x * w00 + b00, 0.0) * w01
    bottom = jnp.maximum(x * w10 + b10, 0.0) * w11
    # Single store into the output tile (keeps the lone vst slot on v5e happy).
    o_ref[...] = jnp.maximum(top + bottom + final_bias, 0.0)


def torch_nn_forward(x, params):
    """x: f32[N]; params: f32[7] = [w00, b00, w01, w10, b10, w11, final_bias].

    Returns f32[N].
    """
    n = x.shape[0]
    x = x.astype(jnp.float32)
    params = params.astype(jnp.float32)

    # ---- layout plumbing: present a lane-dense (rows, 512) slab ----
    rows = max(pl.cdiv(n, _LANES), 1)
    padded = rows * _LANES
    if padded != n:
        # Ragged tail fallback: pad only up to the next 512-lane row.
        # TODO(synk): a fully pad/slice-free ragged path (masked tail store
        # inside the kernel) would save the extra HBM passes this costs.
        x = jnp.pad(x, (0, padded - n))
    x2d = x.reshape(rows, _LANES)

    # ---- block sizing ----
    if rows <= 8:
        block_rows = rows                      # tiny input: one full-extent block
    else:
        # ~rows/4 per block (>= 4 grid steps), rounded up to a sublane multiple,
        # capped at 4 MiB/block so 2x(in+out) double buffers fit v7x VMEM.
        target = ((pl.cdiv(rows, _MIN_GRID_STEPS) + 7) // 8) * 8
        block_rows = min(_MAX_BLOCK_ROWS, target)

    grid = (pl.cdiv(rows, block_rows),)        # ragged final block is allowed

    out = pl.pallas_call(
        _torch_nn_kernel,
        out_shape=jax.ShapeDtypeStruct((rows, _LANES), jnp.float32),
        grid_spec=pltpu.PrefetchScalarGridSpec(
            num_scalar_prefetch=0,
            grid=grid,
            in_specs=[
                pl.BlockSpec(memory_space=pltpu.SMEM),                 # f32[7] scalars
                pl.BlockSpec((block_rows, _LANES), lambda i: (i, 0)),  # input tile
            ],
            out_specs=pl.BlockSpec((block_rows, _LANES), lambda i: (i, 0)),
        ),
        compiler_params=pltpu.CompilerParams(
            dimension_semantics=("parallel",),   # megacore-shardable grid axis
            vmem_limit_bytes=32 * 1024 * 1024,   # <=16 MiB of buffers -> safe everywhere
        ),
    )(params, x2d)

    out = out.reshape(padded)
    return out if padded == n else out[:n]


def torch_nn_reference(x, params):
    w00, b00, w01, w10, b10, w11, final_bias = [params[i] for i in range(7)]
    top = jnp.maximum(x * w00 + b00, 0.0) * w01
    bottom = jnp.maximum(x * w10 + b10, 0.0) * w11
    return jnp.maximum(top + bottom + final_bias, 0.0)


if __name__ == "__main__":
    # Deterministic parameters straight from the module's __init__.
    params = jnp.array([1.7, -0.85, -40.8, 12.6, 0.0, 2.7, -16.0],
                       dtype=jnp.float32)

    # Input exactly as in the reference script: torch.linspace(0, 1, 11).
    x_small = jnp.linspace(0.0, 1.0, 11, dtype=jnp.float32)

    key = jax.random.PRNGKey(0)
    k1, k2 = jax.random.split(key)
    # Lane-aligned input: exercises the zero-copy (no pad / no slice) path.
    x_aligned = jax.random.uniform(k1, (1 << 20,), dtype=jnp.float32)
    # Ragged input: exercises the multi-block grid with a partial last block
    # and the tail pad/slice fallback.
    x_ragged = jax.random.uniform(k2, (300_000,), dtype=jnp.float32)

    for xv in (x_small, x_aligned, x_ragged):
        out = torch_nn_forward(xv, params)
        jax.block_until_ready(out)
        ref = torch_nn_reference(xv, params)
        assert out.shape == xv.shape
        assert jnp.allclose(out, ref, atol=1e-5, rtol=1e-5)

    print("KERNEL_OK")
</pallas_src>

<mosaic_0001>
module attributes {stable_mosaic.version = 11 : i64} {
  func.func @_torch_nn_kernel(%arg0: i32, %arg1: memref<7xf32, #tpu.memory_space<smem>>, %arg2: memref<1x512xf32, #tpu.memory_space<vmem>>, %arg3: memref<1x512xf32, #tpu.memory_space<vmem>>) attributes {dimension_semantics = [#tpu.dimension_semantics<parallel>], iteration_bounds = array<i64: 1>, scalar_prefetch = 0 : i64, scratch_operands = 0 : i64, tpu.core_type = #tpu.core_type<tc>, window_params = [{transform_indices = @transform_0, window_bounds = array<i64: 7>}, {transform_indices = @transform_1, window_bounds = array<i64: 1, 512>}, {transform_indices = @transform_2, window_bounds = array<i64: 1, 512>}]} {
    %c0 = arith.constant 0 : index
    %0 = memref.load %arg1[%c0] : memref<7xf32, #tpu.memory_space<smem>>
    %c1 = arith.constant 1 : index
    %1 = memref.load %arg1[%c1] : memref<7xf32, #tpu.memory_space<smem>>
    %c2 = arith.constant 2 : index
    %2 = memref.load %arg1[%c2] : memref<7xf32, #tpu.memory_space<smem>>
    %c3 = arith.constant 3 : index
    %3 = memref.load %arg1[%c3] : memref<7xf32, #tpu.memory_space<smem>>
    %c4 = arith.constant 4 : index
    %4 = memref.load %arg1[%c4] : memref<7xf32, #tpu.memory_space<smem>>
    %c5 = arith.constant 5 : index
    %5 = memref.load %arg1[%c5] : memref<7xf32, #tpu.memory_space<smem>>
    %c6 = arith.constant 6 : index
    %6 = memref.load %arg1[%c6] : memref<7xf32, #tpu.memory_space<smem>>
    %c0_0 = arith.constant 0 : index
    %c0_1 = arith.constant 0 : index
    %7 = vector.load %arg2[%c0_0, %c0_1] : memref<1x512xf32, #tpu.memory_space<vmem>>, vector<1x512xf32>
    %8 = vector.broadcast %0 : f32 to vector<1x512xf32>
    %9 = arith.mulf %7, %8 : vector<1x512xf32>
    %10 = vector.broadcast %1 : f32 to vector<1x512xf32>
    %11 = arith.addf %9, %10 : vector<1x512xf32>
    %cst = arith.constant 0.000000e+00 : f32
    %12 = vector.broadcast %cst : f32 to vector<1x512xf32>
    %13 = arith.maximumf %11, %12 : vector<1x512xf32>
    %14 = vector.broadcast %2 : f32 to vector<1x512xf32>
    %15 = arith.mulf %13, %14 : vector<1x512xf32>
    %16 = vector.broadcast %3 : f32 to vector<1x512xf32>
    %17 = arith.mulf %7, %16 : vector<1x512xf32>
    %18 = vector.broadcast %4 : f32 to vector<1x512xf32>
    %19 = arith.addf %17, %18 : vector<1x512xf32>
    %cst_2 = arith.constant 0.000000e+00 : f32
    %20 = vector.broadcast %cst_2 : f32 to vector<1x512xf32>
    %21 = arith.maximumf %19, %20 : vector<1x512xf32>
    %22 = vector.broadcast %5 : f32 to vector<1x512xf32>
    %23 = arith.mulf %21, %22 : vector<1x512xf32>
    %24 = arith.addf %15, %23 : vector<1x512xf32>
    %25 = vector.broadcast %6 : f32 to vector<1x512xf32>
    %26 = arith.addf %24, %25 : vector<1x512xf32>
    %cst_3 = arith.constant 0.000000e+00 : f32
    %27 = vector.broadcast %cst_3 : f32 to vector<1x512xf32>
    %28 = arith.maximumf %26, %27 : vector<1x512xf32>
    %c0_4 = arith.constant 0 : index
    %c0_5 = arith.constant 0 : index
    %29 = vector.load %arg3[%c0_4, %c0_5] : memref<1x512xf32, #tpu.memory_space<vmem>>, vector<1x512xf32>
    tpu.vector_store %arg3[%c0_4, %c0_5], %28 {strides = array<i32>} : memref<1x512xf32, #tpu.memory_space<vmem>>, vector<1x512xf32>,
    return
  }
  func.func @transform_0(%arg0: i32) -> i32 {
    %c0_i32 = arith.constant 0 : i32
    %c0_i32_0 = arith.constant 0 : i32
    return %c0_i32 : i32
  }
  func.func @transform_1(%arg0: i32) -> (i32, i32) {
    %c0_i32 = arith.constant 0 : i32
    %c0_i32_0 = arith.constant 0 : i32
    return %arg0, %c0_i32 : i32, i32
  }
  func.func @transform_2(%arg0: i32) -> (i32, i32) {
    %c0_i32 = arith.constant 0 : i32
    %c0_i32_0 = arith.constant 0 : i32
    return %arg0, %c0_i32 : i32, i32
  }
}

</mosaic_0001>

<bundles_post_ra>
// kernel: tpu_custom_call.1
= control target key start
LH: loop header
LB: loop body
LE: loop exit
PB: predicated region body
PF: predicated region fallthrough
CT: control target
= control target key end

     0   :  { %7 = vsyncpa [#allocation5], 0  ;;  %s205_s0 = inlined_call_operand.hbm [shape: f32[7], index: 0, kind: input, shape index: {}]   ;;  %s206_s1 = inlined_call_operand.hbm [shape: f32[1,512], index: 1, kind: input, shape index: {}]   ;;  %s207_s2 = inlined_call_operand.hbm [shape: f32[1,512], index: 2, kind: output, shape index: {}]  }
   0x1   :  { %8 = vsyncpa [#allocation3], 0 }
   0x2   :  { %9 = vsyncpa [#allocation4], 0  ;;  %s91_s11 = scalar_lea.hbm %s205_s0, 16 }
   0x3   :  { %p92_p0 = scmp.ne.s32.totalorder %s205_s0, %s91_s11  ;;  %p95_p1 = scmp.lt.u32.totalorder %s91_s11, %s205_s0 }
   0x5   :  { %p97_p2 = pnand %p95_p1, %p92_p0 }
   0x7   :  { %100 = shalt.err (!%p97_p2)
}
   0x8   :  { %s151_s16 = smov [#allocation2]   ;;  %s152_s19 = smov [#allocation6]  }
   0x9   :  { %17 = dma.hbm_to_smem %s205_s0, 16, %s151_s16, [#allocation5]  }
   0xa   :  { %s24_s20 = sshll.u32 %s152_s19, 4  ;;  %s101_s23 = scalar_lea.hbm %s206_s1, 64  ;;  %s25_s20 = int_to_ptr.vmem [resolvable:$true] %s24_s20 }
   0xb   :  { %p102_p3 = scmp.ne.s32.totalorder %s206_s1, %s101_s23  ;;  %p105_p4 = scmp.lt.u32.totalorder %s101_s23, %s206_s1 }
   0xd   :  { %p107_p5 = pnand %p105_p4, %p102_p3 }
   0xf   :  { %110 = shalt.err (!%p107_p5)
}
  0x10   :  { %s111_s28 = scalar_lea.vmem %s25_s20, 64  ;;  %p116_p7 = scmp.lt.s32.totalorder %s25_s20, %s25_s20 }
  0x11   :  { %p112_p6 = scmp.ne.s32.totalorder %s25_s20, %s111_s28  ;;  %p117_p8 = scmp.lt.s32.totalorder %s111_s28, %s111_s28 }
  0x13   :  { %p118_p9 = por %p117_p8, %p116_p7 }
  0x15   :  { %p119_p10 = pnand %p118_p9, %p112_p6 }
  0x17   :  { %122 = shalt.err (!%p119_p10)
}
  0x18   :  { %27 = dma.hbm_to_vmem [thread:$0]  %s206_s1, 64, %s25_s20, [#allocation3]  }
  0x19   :  { %145 = dma.done.wait [#allocation5], 16  }
  0x1a   :  { %146 = vsyncadd [#allocation5], 4294967280 }
  0x1b   :  { %147 = dma.done.wait [#allocation3], 64  }
  0x1c   :  { %148 = vsyncadd [#allocation3], 4294967232 }
  0x1d   :  { %34 = sfence }
  0x1e   :  { %s35_s30 = sld [smem:[#allocation2]]  ;;  %s82_s3 = sld [smem:[#allocation2 + $0x1]]  ;;  %v42_v0 = vld [vmem:[#allocation6] sm:$0xf]  ;;  %v61_v16 = vlaneseq }
  0x1f   :  { %s84_s4 = sld [smem:[#allocation2 + $0x3]]  ;;  %s83_s5 = sld [smem:[#allocation2 + $0x2]] }
  0x20   :  { %s85_s6 = sld [smem:[#allocation2 + $0x4]]  ;;  %s86_s7 = sld [smem:[#allocation2 + $0x5]]  ;;  %vm63_vm0 = vcmp.lt.s32.totalorder %v61_v16, 512 }
  0x21   :  { %s87_s8 = sld [smem:[#allocation2 + $0x6]]  ;;  %s153_s1 = smov [#allocation7]  }
  0x22   :  { %s72_s9 = sshll.u32 %s153_s1, 4  ;;  %s73_s9 = int_to_ptr.vmem [resolvable:$true] %s72_s9 }
  0x23   :  { %s123_s10 = scalar_lea.vmem %s73_s9, 64  ;;  %p128_p12 = scmp.lt.s32.totalorder %s73_s9, %s73_s9 }
  0x24   :  { %v43_v1 = vstv %s35_s30  ;;  %v45_v2 = vstv %s82_s3  ;;  %p124_p11 = scmp.ne.s32.totalorder %s73_s9, %s123_s10  ;;  %p129_p13 = scmp.lt.s32.totalorder %s123_s10, %s123_s10 }
  0x25   :  { %v44_v3 = vmul.f32 %v43_v1, %v42_v0  ;;  %v50_v4 = vstv %s84_s4  ;;  %v48_v8 = vstv %s83_s5 }
  0x26   :  { %v51_v5 = vmul.f32 %v50_v4, %v42_v0  ;;  %v52_v6 = vstv %s85_s6  ;;  %v55_v11 = vstv %s86_s7  ;;  %p130_p0 = por %p129_p13, %p128_p12 }
  0x27   :  { %v46_v7 = vadd.f32 %v45_v2, %v44_v3  ;;  %v58_v15 = vstv %s87_s8 }
  0x28   :  { %v53_v9 = vadd.f32 %v52_v6, %v51_v5  ;;  %p131_p1 = pnand %p130_p0, %p124_p11 }
  0x29   :  { %v47_v10 = vmax.f32 %v46_v7, 0.0 }
  0x2a   :  { %v54_v12 = vmax.f32 %v53_v9, 0.0 }
  0x2b   :  { %v49_v13 = vmul.f32 %v48_v8, %v47_v10 }
  0x2c   :  { %v56_v14 = vmul.f32 %v55_v11, %v54_v12 }
  0x2e   :  { %v57_v17 = vadd.f32 %v56_v14, %v49_v13 }
  0x30   :  { %v59_v18 = vadd.f32 %v58_v15, %v57_v17 }
  0x32   :  { %v60_v19 = vmax.f32 %v59_v18, 0.0 }
  0x34   :  { %65 = vst.msk [vmem:[#allocation7] sm:$0xf] %vm63_vm0, %v60_v19 }
  0x35   :  { %134 = shalt.err (!%p131_p1)
}
  0x36   :  { %s135_s13 = scalar_lea.hbm %s207_s2, 64 }
  0x37   :  { %p136_p2 = scmp.ne.s32.totalorder %s207_s2, %s135_s13  ;;  %p139_p3 = scmp.lt.u32.totalorder %s135_s13, %s207_s2 }
  0x39   :  { %p141_p4 = pnand %p139_p3, %p136_p2 }
  0x3b   :  { %144 = shalt.err (!%p141_p4)
}
  0x3c   :  { %75 = dma.vmem_to_hbm [thread:$0]  %s73_s9, 64, %s207_s2, [#allocation4]  }
  0x3d   :  { %149 = dma.done.wait [#allocation4], 64  }
  0x3e   :  { %150 = vsyncadd [#allocation4], 4294967232 }
  0x3f   :  { %79 = vsyncpa [#allocation3], 1 }
  0x40   :  { %80 = vsyncpa [#allocation4], 1 }
  0x41   :  { %81 = vsyncpa [#allocation5], 1 }

</bundles_post_ra>
